<compile_context>
chip_gen: v7x
topology: tpu7x:2x2x1
jax: 0.10.0
libtpu: 0.0.40
codegen_flags: <defaults>
</compile_context>

<pallas_src>
import jax
import jax.numpy as jnp
import numpy as np
from jax.experimental import pallas as pl
from jax.experimental.pallas import tpu as pltpu

EPS = 1e-5
VMEM = pltpu.MemorySpace.VMEM
VMEM_LIMIT_BYTES = 48 * 1024 * 1024     # explicit scoped-VMEM cap (< v7x 64 MiB physical)
MAX_ROW_TILE = 512                      # row-tile upper bound (sublane axis)
TILE_BYTE_BUDGET = 4 << 20              # ~4 MiB per tiled block


def _round_up(x, m):
    return ((x + m - 1) // m) * m


def _pick_tile(rows, row_bytes):
    """Pick a row tile: multiple of 8, <= MAX_ROW_TILE, ~TILE_BYTE_BUDGET bytes."""
    t = max(8, min(MAX_ROW_TILE, TILE_BYTE_BUDGET // max(row_bytes, 1)))
    t = max(8, (t // 8) * 8)
    return min(t, _round_up(rows, 8))


def _pad_rows(x, rows_padded):
    rows = x.shape[0]
    if rows_padded == rows:
        return x
    pad = [(0, rows_padded - rows)] + [(0, 0)] * (x.ndim - 1)
    return jnp.pad(x, pad)


def _layernorm(x, gamma, beta):
    mu = jnp.mean(x, axis=-1, keepdims=True)
    var = jnp.mean(jnp.square(x - mu), axis=-1, keepdims=True)
    return (x - mu) * jax.lax.rsqrt(var + EPS) * gamma + beta


# ---- kernel 1: WordEmbedding LayerNorm + align_layer matmul (fused cat+bin rows) ----
def ln_align_kernel(x_ref, g_ref, b_ref, w_ref, o_ref):
    ln = _layernorm(x_ref[...], g_ref[...], b_ref[...])              # (TM, H) f32
    o_ref[...] = jnp.dot(ln.astype(jnp.bfloat16), w_ref[...],        # bf16 MXU, f32 acc
                         preferred_element_type=jnp.float32)


# ---- kernel 2: NumEmbedding column stats: LN, masked mean over tokens, @W once ----
def num_colavg_kernel(col_ref, mask_ref, g_ref, b_ref, bias_ref, w_ref,
                      colw_ref, biasw_ref):
    ln = _layernorm(col_ref[...], g_ref[...][None], b_ref[...][None])   # (Nc, Sn, H)
    mask = mask_ref[...][:, :, None]                                    # (Nc, Sn, 1)
    denom = jnp.sum(mask, axis=1)                                       # (Nc, 1)
    # NOTE: an all-zero mask column gives Inf/NaN, matching the PyTorch module.
    col_avg = jnp.sum(ln * mask, axis=1) / denom                        # (Nc, H)
    w = w_ref[...]                                                      # (H, H) bf16
    colw_ref[...] = jnp.dot(col_avg.astype(jnp.bfloat16), w,
                            preferred_element_type=jnp.float32)         # (Nc, H)
    biasw_ref[...] = jnp.dot(bias_ref[...].astype(jnp.bfloat16), w,
                             preferred_element_type=jnp.float32)        # (1, H)


# ---- kernel 3: numerical broadcast: x_num * (col_avg @ W) + (bias @ W), B-tiled ----
def num_scale_kernel(xnum_ref, colw_ref, biasw_ref, o_ref):
    o_ref[...] = (xnum_ref[...][:, :, None] * colw_ref[...][None, :, :]
                  + biasw_ref[...][None, :, :])


# ------------------------------- wrappers -------------------------------------------
def ln_align(x2d, gamma, beta, w_bf16):
    M, H = x2d.shape
    tm = _pick_tile(M, H * 4)
    m_pad = _round_up(M, tm)
    x_p = _pad_rows(x2d, m_pad)
    out = pl.pallas_call(
        ln_align_kernel,
        out_shape=jax.ShapeDtypeStruct((m_pad, H), jnp.float32),
        grid=(m_pad // tm,),
        in_specs=[
            pl.BlockSpec((tm, H), lambda i: (i, 0)),   # activations (pipelined)
            pl.BlockSpec((1, H), lambda i: (0, 0)),    # gamma (resident)
            pl.BlockSpec((1, H), lambda i: (0, 0)),    # beta  (resident)
            pl.BlockSpec((H, H), lambda i: (0, 0)),    # W^T   (resident, bf16)
        ],
        out_specs=pl.BlockSpec((tm, H), lambda i: (i, 0)),
        compiler_params=pltpu.CompilerParams(
            dimension_semantics=("parallel",),
            vmem_limit_bytes=VMEM_LIMIT_BYTES),
    )(x_p, gamma, beta, w_bf16)
    return out[:M]


def num_col_avg_w(col_emb, mask2, gamma, beta, num_bias, w_bf16):
    Nc, Sn, H = col_emb.shape
    return pl.pallas_call(
        num_colavg_kernel,
        out_shape=(jax.ShapeDtypeStruct((Nc, H), jnp.float32),
                   jax.ShapeDtypeStruct((1, H), jnp.float32)),
        in_specs=[pl.BlockSpec(memory_space=VMEM)] * 6,
        out_specs=(pl.BlockSpec(memory_space=VMEM),
                   pl.BlockSpec(memory_space=VMEM)),
        compiler_params=pltpu.CompilerParams(vmem_limit_bytes=VMEM_LIMIT_BYTES),
    )(col_emb, mask2, gamma, beta, num_bias, w_bf16)


def num_scale(x_num, colw, biasw):
    B, Nc = x_num.shape
    H = colw.shape[1]
    tb = _pick_tile(B, Nc * H * 4)
    b_pad = _round_up(B, tb)
    x_p = _pad_rows(x_num, b_pad)
    out = pl.pallas_call(
        num_scale_kernel,
        out_shape=jax.ShapeDtypeStruct((b_pad, Nc, H), jnp.float32),
        grid=(b_pad // tb,),
        in_specs=[
            pl.BlockSpec((tb, Nc), lambda i: (i, 0)),      # x_num rows (pipelined)
            pl.BlockSpec((Nc, H), lambda i: (0, 0)),       # col_avg @ W (resident)
            pl.BlockSpec((1, H), lambda i: (0, 0)),        # bias @ W (resident)
        ],
        out_specs=pl.BlockSpec((tb, Nc, H), lambda i: (i, 0, 0)),
        compiler_params=pltpu.CompilerParams(
            dimension_semantics=("parallel",),
            vmem_limit_bytes=VMEM_LIMIT_BYTES),
    )(x_p, colw, biasw)
    return out[:B]


# ------------------------------- module ---------------------------------------------
def init_params(key, vocab_size, hidden_dim):
    k1, k2, k3 = jax.random.split(key, 3)
    emb = jax.random.normal(k1, (vocab_size, hidden_dim), jnp.float32) * 0.02
    emb = emb.at[0].set(0.0)                             # padding_idx = 0
    gamma = jnp.ones((1, hidden_dim), jnp.float32)       # LayerNorm weight
    beta = jnp.zeros((1, hidden_dim), jnp.float32)       # LayerNorm bias
    bound = 1.0 / float(np.sqrt(hidden_dim))
    num_bias = jax.random.uniform(k2, (1, hidden_dim), jnp.float32, -bound, bound)
    # nn.Linear(H, H, bias=False): y = x @ W.T ; we store W.T directly.
    w_t = jax.random.uniform(k3, (hidden_dim, hidden_dim), jnp.float32, -bound, bound)
    return dict(emb=emb, gamma=gamma, beta=beta, num_bias=num_bias, w_t=w_t)


def feature_processor(params, x_num=None, num_col_input_ids=None, num_att_mask=None,
                      x_cat_input_ids=None, cat_att_mask=None,
                      x_bin_input_ids=None, bin_att_mask=None):
    emb_tbl, gamma, beta = params["emb"], params["gamma"], params["beta"]
    num_bias, w_t = params["num_bias"], params["w_t"]
    H = emb_tbl.shape[1]
    w_bf16 = w_t.astype(jnp.bfloat16)                    # MXU-native weight, cast once

    embeddings, masks = [], []

    # ---------------- numerical path ----------------
    if x_num is not None and num_col_input_ids is not None:
        B, Nc = x_num.shape
        col_tok_emb = emb_tbl[num_col_input_ids]                         # (Nc, Sn, H)
        colw, biasw = num_col_avg_w(
            col_tok_emb, num_att_mask.astype(jnp.float32),
            gamma, beta, num_bias, w_bf16)
        num_feat = num_scale(x_num.astype(jnp.float32), colw, biasw)     # (B, Nc, H)
        embeddings.append(num_feat)
        masks.append(jnp.ones((B, Nc), jnp.float32))                     # torch.ones(...)

    # ---------------- categorical + binary paths (fused into one LN+matmul call) ----
    tok_paths = []
    if x_cat_input_ids is not None:
        tok_paths.append((x_cat_input_ids, cat_att_mask))
    if x_bin_input_ids is not None:
        if x_bin_input_ids.shape[1] == 0:
            x_bin_input_ids = jnp.zeros((x_bin_input_ids.shape[0], 1), jnp.int32)
        tok_paths.append((x_bin_input_ids, bin_att_mask))
    if tok_paths:
        # TODO(synk): at scale, fuse this gather into the kernel via scalar-prefetched
        # token ids (PrefetchScalarGridSpec + manual row DMA) to skip one HBM round trip.
        flat_ids = jnp.concatenate([ids.reshape(-1) for ids, _ in tok_paths])
        rows = emb_tbl[flat_ids]                                         # (sum B*S, H)
        feat = ln_align(rows, gamma, beta, w_bf16)
        off = 0
        for ids, mask in tok_paths:
            b, s = ids.shape
            embeddings.append(feat[off:off + b * s].reshape(b, s, H))
            masks.append(mask.astype(jnp.float32))
            off += b * s

    # hidden_dropout_prob = 0 -> dropout is identity (inference semantics)
    return {
        "embedding": jnp.concatenate(embeddings, axis=1),
        "attention_mask": jnp.concatenate(masks, axis=1),
    }


# ------------------------------- pure-JAX reference ---------------------------------
def feature_processor_ref(params, x_num, num_col_input_ids, num_att_mask,
                          x_cat_input_ids, cat_att_mask, x_bin_input_ids, bin_att_mask):
    """Pure-JAX f32 reference mirroring the PyTorch forward pass."""
    emb_tbl, gamma, beta = params["emb"], params["gamma"], params["beta"]
    num_bias, w_t = params["num_bias"], params["w_t"]

    def word_embedding(ids):
        return _layernorm(emb_tbl[ids], gamma[0], beta[0])

    B, Nc = x_num.shape
    embeddings, masks = [], []
    col = word_embedding(num_col_input_ids)                              # (Nc, Sn, H)
    m = num_att_mask.astype(jnp.float32)
    col_avg = (col * m[..., None]).sum(1) / m.sum(1, keepdims=True)
    num_feat = (x_num.astype(jnp.float32)[..., None] * col_avg[None] + num_bias[None]) @ w_t
    embeddings.append(num_feat)
    masks.append(jnp.ones((B, Nc), jnp.float32))
    embeddings.append(word_embedding(x_cat_input_ids) @ w_t)
    masks.append(cat_att_mask.astype(jnp.float32))
    embeddings.append(word_embedding(x_bin_input_ids) @ w_t)
    masks.append(bin_att_mask.astype(jnp.float32))
    return {"embedding": jnp.concatenate(embeddings, 1),
            "attention_mask": jnp.concatenate(masks, 1)}


if __name__ == "__main__":
    vocab_size, hidden = 100, 32
    B, Nc, Sn, Sc, Sb = 2, 3, 4, 8, 5

    key = jax.random.PRNGKey(0)
    kp, k1, k2, k3, k4 = jax.random.split(key, 5)
    params = init_params(kp, vocab_size, hidden)

    x_num = jax.random.normal(k1, (B, Nc), jnp.float32)
    num_col_input_ids = jax.random.randint(k2, (Nc, Sn), 1, vocab_size)
    num_att_mask = jnp.array([[1, 1, 1, 0],
                              [1, 1, 0, 0],
                              [1, 1, 1, 1]], jnp.float32)
    x_cat_input_ids = jax.random.randint(k3, (B, Sc), 1, vocab_size)
    cat_att_mask = jnp.concatenate(
        [jnp.ones((B, Sc - 2), jnp.float32), jnp.zeros((B, 2), jnp.float32)], axis=1)
    x_bin_input_ids = jax.random.randint(k4, (B, Sb), 1, vocab_size)
    bin_att_mask = jnp.ones((B, Sb), jnp.float32)

    out = feature_processor(params, x_num, num_col_input_ids, num_att_mask,
                            x_cat_input_ids, cat_att_mask, x_bin_input_ids, bin_att_mask)
    jax.block_until_ready(out)

    ref = feature_processor_ref(params, x_num, num_col_input_ids, num_att_mask,
                                x_cat_input_ids, cat_att_mask, x_bin_input_ids, bin_att_mask)
    assert out["embedding"].shape == (B, Nc + Sc + Sb, hidden)
    assert out["attention_mask"].shape == (B, Nc + Sc + Sb)
    # Loosened tolerance: the kernels feed the MXU bf16 inputs (f32 accumulation),
    # while the reference runs the matmul fully in f32.
    np.testing.assert_allclose(np.asarray(out["embedding"]),
                               np.asarray(ref["embedding"]), rtol=5e-2, atol=5e-2)
    np.testing.assert_allclose(np.asarray(out["attention_mask"]),
                               np.asarray(ref["attention_mask"]), rtol=0, atol=0)
    print("KERNEL_OK")
</pallas_src>

<mosaic_0001>
module attributes {stable_mosaic.version = 11 : i64} {
  func.func @num_colavg_kernel(%arg0: memref<3x4x32xf32, #tpu.memory_space<vmem>>, %arg1: memref<3x4xf32, #tpu.memory_space<vmem>>, %arg2: memref<1x32xf32, #tpu.memory_space<vmem>>, %arg3: memref<1x32xf32, #tpu.memory_space<vmem>>, %arg4: memref<1x32xf32, #tpu.memory_space<vmem>>, %arg5: memref<32x32xbf16, #tpu.memory_space<vmem>>, %arg6: memref<3x32xf32, #tpu.memory_space<vmem>>, %arg7: memref<1x32xf32, #tpu.memory_space<vmem>>) attributes {dimension_semantics = [], scalar_prefetch = 0 : i64, scratch_operands = 0 : i64, tpu.core_type = #tpu.core_type<tc>} {
    %c0 = arith.constant 0 : index
    %c0_0 = arith.constant 0 : index
    %c0_1 = arith.constant 0 : index
    %0 = vector.load %arg0[%c0, %c0_0, %c0_1] : memref<3x4x32xf32, #tpu.memory_space<vmem>>, vector<3x4x32xf32>
    %c0_2 = arith.constant 0 : index
    %c0_3 = arith.constant 0 : index
    %1 = vector.load %arg2[%c0_2, %c0_3] : memref<1x32xf32, #tpu.memory_space<vmem>>, vector<1x32xf32>
    %2 = vector.shape_cast %1 : vector<1x32xf32> to vector<1x1x32xf32>
    %c0_4 = arith.constant 0 : index
    %c0_5 = arith.constant 0 : index
    %3 = vector.load %arg3[%c0_4, %c0_5] : memref<1x32xf32, #tpu.memory_space<vmem>>, vector<1x32xf32>
    %4 = vector.shape_cast %3 : vector<1x32xf32> to vector<1x1x32xf32>
    %cst = arith.constant dense<0.000000e+00> : vector<3x4xf32>
    %5 = vector.multi_reduction <add>, %0, %cst [2] : vector<3x4x32xf32> to vector<3x4xf32>
    %6 = vector.shape_cast %5 : vector<3x4xf32> to vector<3x4x1xf32>
    %cst_6 = arith.constant 3.200000e+01 : f32
    %7 = vector.broadcast %cst_6 : f32 to vector<3x4x1xf32>
    %8 = arith.divf %6, %7 : vector<3x4x1xf32>
    %9 = vector.broadcast %8 : vector<3x4x1xf32> to vector<3x4x32xf32>
    %10 = arith.subf %0, %9 : vector<3x4x32xf32>
    %11 = arith.mulf %10, %10 : vector<3x4x32xf32>
    %cst_7 = arith.constant dense<0.000000e+00> : vector<3x4xf32>
    %12 = vector.multi_reduction <add>, %11, %cst_7 [2] : vector<3x4x32xf32> to vector<3x4xf32>
    %13 = vector.shape_cast %12 : vector<3x4xf32> to vector<3x4x1xf32>
    %cst_8 = arith.constant 3.200000e+01 : f32
    %14 = vector.broadcast %cst_8 : f32 to vector<3x4x1xf32>
    %15 = arith.divf %13, %14 : vector<3x4x1xf32>
    %16 = vector.broadcast %8 : vector<3x4x1xf32> to vector<3x4x32xf32>
    %17 = arith.subf %0, %16 : vector<3x4x32xf32>
    %cst_9 = arith.constant 9.99999974E-6 : f32
    %18 = vector.broadcast %cst_9 : f32 to vector<3x4x1xf32>
    %19 = arith.addf %15, %18 : vector<3x4x1xf32>
    %20 = math.rsqrt %19 : vector<3x4x1xf32>
    %21 = vector.broadcast %20 : vector<3x4x1xf32> to vector<3x4x32xf32>
    %22 = arith.mulf %17, %21 : vector<3x4x32xf32>
    %23 = vector.broadcast %2 : vector<1x1x32xf32> to vector<3x4x32xf32>
    %24 = arith.mulf %22, %23 : vector<3x4x32xf32>
    %25 = vector.broadcast %4 : vector<1x1x32xf32> to vector<3x4x32xf32>
    %26 = arith.addf %24, %25 : vector<3x4x32xf32>
    %c0_10 = arith.constant 0 : index
    %c0_11 = arith.constant 0 : index
    %27 = vector.load %arg1[%c0_10, %c0_11] : memref<3x4xf32, #tpu.memory_space<vmem>>, vector<3x4xf32>
    %28 = vector.shape_cast %27 : vector<3x4xf32> to vector<3x4x1xf32>
    %cst_12 = arith.constant dense<0.000000e+00> : vector<3x1xf32>
    %29 = vector.multi_reduction <add>, %28, %cst_12 [1] : vector<3x4x1xf32> to vector<3x1xf32>
    %30 = vector.broadcast %28 : vector<3x4x1xf32> to vector<3x4x32xf32>
    %31 = arith.mulf %26, %30 : vector<3x4x32xf32>
    %cst_13 = arith.constant dense<0.000000e+00> : vector<3x32xf32>
    %32 = vector.multi_reduction <add>, %31, %cst_13 [1] : vector<3x4x32xf32> to vector<3x32xf32>
    %33 = vector.broadcast %29 : vector<3x1xf32> to vector<3x32xf32>
    %34 = arith.divf %32, %33 : vector<3x32xf32>
    %c0_14 = arith.constant 0 : index
    %c0_15 = arith.constant 0 : index
    %35 = vector.load %arg5[%c0_14, %c0_15] : memref<32x32xbf16, #tpu.memory_space<vmem>>, vector<32x32xbf16>
    %36 = arith.truncf %34 : vector<3x32xf32> to vector<3x32xbf16>
    %cst_16 = arith.constant dense<0.000000e+00> : vector<3x32xf32>
    %37 = tpu.matmul %36, %35, %cst_16 {dimension_numbers = #tpu.dot_dimension_numbers<[1], [0], [0], [1], [0, 0, 1, 1], [], []>} : vector<3x32xbf16>, vector<32x32xbf16>, vector<3x32xf32> -> vector<3x32xf32>
    %c0_17 = arith.constant 0 : index
    %c0_18 = arith.constant 0 : index
    %38 = vector.load %arg6[%c0_17, %c0_18] : memref<3x32xf32, #tpu.memory_space<vmem>>, vector<3x32xf32>
    tpu.vector_store %arg6[%c0_17, %c0_18], %37 {strides = array<i32>} : memref<3x32xf32, #tpu.memory_space<vmem>>, vector<3x32xf32>,
    %c0_19 = arith.constant 0 : index
    %c0_20 = arith.constant 0 : index
    %39 = vector.load %arg4[%c0_19, %c0_20] : memref<1x32xf32, #tpu.memory_space<vmem>>, vector<1x32xf32>
    %40 = arith.truncf %39 : vector<1x32xf32> to vector<1x32xbf16>
    %cst_21 = arith.constant dense<0.000000e+00> : vector<1x32xf32>
    %41 = tpu.matmul %40, %35, %cst_21 {dimension_numbers = #tpu.dot_dimension_numbers<[1], [0], [0], [1], [0, 0, 1, 1], [], []>} : vector<1x32xbf16>, vector<32x32xbf16>, vector<1x32xf32> -> vector<1x32xf32>
    %c0_22 = arith.constant 0 : index
    %c0_23 = arith.constant 0 : index
    %42 = vector.load %arg7[%c0_22, %c0_23] : memref<1x32xf32, #tpu.memory_space<vmem>>, vector<1x32xf32>
    tpu.vector_store %arg7[%c0_22, %c0_23], %41 {strides = array<i32>} : memref<1x32xf32, #tpu.memory_space<vmem>>, vector<1x32xf32>,
    return
  }
}

</mosaic_0001>

<bundles_post_ra>
// kernel: tpu_custom_call.1
= control target key start
LH: loop header
LB: loop body
LE: loop exit
PB: predicated region body
PF: predicated region fallthrough
CT: control target
= control target key end

     0   :  { %13 = vsyncpa [#allocation3], 0  ;;  %s672_s0 = inlined_call_operand.hbm [shape: f32[3,4,32], index: 0, kind: input, shape index: {}]   ;;  %s673_s1 = inlined_call_operand.hbm [shape: f32[3,4], index: 1, kind: input, shape index: {}]   ;;  %s674_s2 = inlined_call_operand.vmem [shape: f32[1,32], index: 2, kind: input, shape index: {}]   ;;  %s675_s3 = inlined_call_operand.vmem [shape: f32[1,32], index: 3, kind: input, shape index: {}]   ;;  %s676_s4 = inlined_call_operand.hbm [shape: f32[1,32], index: 4, kind: input, shape index: {}]   ;;  %s677_s5 = inlined_call_operand.vmem [shape: bf16[32,32], index: 5, kind: input, shape index: {}]   ;;  %s678_s6 = inlined_call_operand.hbm [shape: f32[3,32], index: 6, kind: output, shape index: {0}]   ;;  %s679_s7 = inlined_call_operand.hbm [shape: f32[1,32], index: 7, kind: output, shape index: {1}]  }
   0x1   :  { %14 = vsyncpa [#allocation6], 0 }
   0x2   :  { %15 = vsyncpa [#allocation4], 0 }
   0x3   :  { %16 = vsyncpa [#allocation10], 0  ;;  %s525_s24 = smov [#allocation5]   ;;  %s526_s26 = smov [#allocation2]  }
   0x4   :  { %s35_s25 = sshll.u32 %s525_s24, 4  ;;  %s22_s27 = sshll.u32 %s526_s26, 4  ;;  %s36_s25 = int_to_ptr.vmem [resolvable:$true] %s35_s25  ;;  %s574_s27 = int_to_ptr.vmem [resolvable:$true] %s22_s27 }
   0x5   :  { %s407_s30 = scalar_lea.hbm %s673_s1, 64 }
   0x6   :  { %p408_p0 = scmp.ne.s32.totalorder %s673_s1, %s407_s30  ;;  %p411_p1 = scmp.lt.u32.totalorder %s407_s30, %s673_s1 }
   0x8   :  { %p413_p2 = pnand %p411_p1, %p408_p0 }
   0xa   :  { %416 = shalt.err (!%p413_p2)
}
   0xb   :  { %s417_s12 = scalar_lea.vmem %s36_s25, 64  ;;  %p422_p4 = scmp.lt.s32.totalorder %s36_s25, %s36_s25 }
   0xc   :  { %p418_p3 = scmp.ne.s32.totalorder %s36_s25, %s417_s12  ;;  %p423_p5 = scmp.lt.s32.totalorder %s417_s12, %s417_s12 }
   0xe   :  { %p424_p6 = por %p423_p5, %p422_p4 }
  0x10   :  { %p425_p7 = pnand %p424_p6, %p418_p3 }
  0x12   :  { %428 = shalt.err (!%p425_p7)
}
  0x13   :  { %38 = dma.hbm_to_vmem [thread:$0]  %s673_s1, 64, %s36_s25, [#allocation6]  }
  0x14   :  { %s429_s17 = scalar_lea.hbm %s672_s0, 192 }
  0x15   :  { %p430_p8 = scmp.ne.s32.totalorder %s672_s0, %s429_s17  ;;  %p433_p9 = scmp.lt.u32.totalorder %s429_s17, %s672_s0 }
  0x17   :  { %p435_p10 = pnand %p433_p9, %p430_p8 }
  0x19   :  { %438 = shalt.err (!%p435_p10)
}
  0x1a   :  { %s439_s22 = scalar_lea.vmem %s574_s27, 192  ;;  %p444_p12 = scmp.lt.s32.totalorder %s574_s27, %s574_s27 }
  0x1b   :  { %p440_p11 = scmp.ne.s32.totalorder %s574_s27, %s439_s22  ;;  %p445_p13 = scmp.lt.s32.totalorder %s439_s22, %s439_s22 }
  0x1d   :  { %p446_p0 = por %p445_p13, %p444_p12 }
  0x1f   :  { %p447_p1 = pnand %p446_p0, %p440_p11 }
  0x21   :  { %450 = shalt.err (!%p447_p1)
}
  0x22   :  { %s527_s1 = smov 64   ;;  %s528_s23 = smov 4  }
  0x23   :  { %28 = dma.hbm_to_vmem [thread:$0]  %s672_s0, 192, %s574_s27, [#allocation3], %s527_s1, %s527_s1, %s528_s23  }
  0x24   :  { %s529_s26 = smov [#allocation7]   ;;  %s451_s8 = scalar_lea.hbm %s676_s4, 16 }
  0x25   :  { %s49_s28 = sshll.u32 %s529_s26, 4  ;;  %p452_p2 = scmp.ne.s32.totalorder %s676_s4, %s451_s8  ;;  %s50_s28 = int_to_ptr.vmem [resolvable:$true] %s49_s28 }
  0x26   :  { %p455_p3 = scmp.lt.u32.totalorder %s451_s8, %s676_s4 }
  0x28   :  { %p457_p4 = pnand %p455_p3, %p452_p2 }
  0x2a   :  { %460 = shalt.err (!%p457_p4)
}
  0x2b   :  { %s461_s13 = scalar_lea.vmem %s50_s28, 16  ;;  %s465_s0 = scalar_lea.vmem %s50_s28, 32 }
  0x2c   :  { %p462_p5 = scmp.ne.s32.totalorder %s50_s28, %s461_s13  ;;  %p466_p6 = scmp.lt.s32.totalorder %s50_s28, %s50_s28 }
  0x2d   :  { %p467_p7 = scmp.lt.s32.totalorder %s465_s0, %s461_s13 }
  0x2f   :  { %p468_p8 = por %p467_p7, %p466_p6 }
  0x31   :  { %p469_p9 = pnand %p468_p8, %p462_p5 }
  0x33   :  { %472 = shalt.err (!%p469_p9)
}
  0x34   :  { %52 = dma.hbm_to_vmem [thread:$0]  %s676_s4, 16, %s50_s28, [#allocation6]  }
  0x35   :  { %517 = dma.done.wait [#allocation3], 192  }
  0x36   :  { %518 = vsyncadd [#allocation3], 4294967104 }
  0x37   :  { %519 = dma.done.wait [#allocation6], 80  }
  0x38   :  { %520 = vsyncadd [#allocation6], 4294967216  ;;  %vm70_vm0 = vcmask 257024   ;;  %v65_v0 = vld [vmem:[#allocation2] sm:$0xf]  ;;  %v130_v15 = vlaneseq  ;;  %v393_v30 = vld [vmem:[%s677_s5] sm:$0xff]  }
  0x39   :  { %v66_v1 = vld [vmem:[#allocation2 + $0x4] sm:$0xf]  ;;  %v67_v2 = vld [vmem:[#allocation2 + $0x8] sm:$0xf]  ;;  %v71_v3 = vsel %vm70_vm0, %v65_v0, 0.0  ;;  %v530_v31 = vmov 0.0  }
  0x3a   :  { %v77_v4 = vsel %vm70_vm0, %v67_v2, 0.0  ;;  %72 = vadd.xlane.f32.xlu0 %v71_v3  ;;  %v74_v5 = vsel %vm70_vm0, %v66_v1, 0.0  ;;  %v131_v17 = vshrl.u32 %v130_v15, 7  ;;  %v129_v19 = vld [vmem:[#allocation5] sm:$0x7]  ;;  %376 = vmatprep.subr.bf16.mxu1 %v530_v31  ;;  %v394_v32 = vld [vmem:[%s677_s5 + $0x8] sm:$0xff]  }
  0x3b   :  { %78 = vadd.xlane.f32.xlu1 %v77_v4  ;;  %368 = vmatprep.subr.bf16.mxu0 %v530_v31  ;;  %v279_v33 = vld [vmem:[#allocation7] sm:$0x1]  ;;  %vm233_vm1 = vcmask 261120   ;;  %vm531_vm2 = vmmov 0   ;;  %vm151_vm3 = vcmask 1043456   ;;  %vm216_vm4 = vcmask 1041409  }
  0x3c   :  { %v139_v18 = vsub.s32 1, %v131_v17  ;;  %v132_v21 = vsub.s32 0, %v131_v17  ;;  %v146_v28 = vsub.s32 2, %v131_v17  ;;  %377 = vmatpush3.bf16.msra.mxu1 %v393_v30  ;;  %369 = vmatpush3.bf16.msra.mxu0 %v393_v30  ;;  %v280_v34 = vpack.c.bf16 %v279_v33, %v279_v33  ;;  %v356_v47 = vld [vmem:[%s674_s2] ss:$0 sm:$0xff]  ;;  %s532_s2 = smov [#allocation9]  }
  0x3d   :  { %378 = vmatprep.subr.bf16.mxu1 %v530_v31  ;;  %370 = vmatprep.subr.bf16.mxu0 %v530_v31  ;;  %v357_v53 = vld [vmem:[%s675_s3] ss:$0 sm:$0xff]  ;;  %vm218_vm5 = vcmask 1042434   ;;  %vm324_vm6 = vcmask 253952   ;;  %s342_s3 = sshll.u32 %s532_s2, 4  ;;  %s343_s3 = int_to_ptr.vmem [resolvable:$true] %s342_s3 }
  0x3e   :  { %75 = vadd.xlane.f32.xlu0 %v74_v5  ;;  %v140_v20 = vrot.slane %v129_v19, %v139_v18  ;;  %v133_v22 = vrot.slane %v129_v19, %v132_v21  ;;  %v147_v29 = vrot.slane %v129_v19, %v146_v28  ;;  %380 = vmatprep.mubr.msk.bf16.mxu1 %vm531_vm2, %v530_v31  ;;  %s473_s21 = scalar_lea.vmem %s343_s3, 16  ;;  %s477_s22 = scalar_lea.vmem %s343_s3, 32 }
  0x3f   :  { %372 = vmatprep.mubr.msk.bf16.mxu0 %vm531_vm2, %v530_v31  ;;  %p474_p10 = scmp.ne.s32.totalorder %s343_s3, %s473_s21  ;;  %p478_p11 = scmp.lt.s32.totalorder %s343_s3, %s343_s3 }
  0x40   :  { %379 = vmatpush3.bf16.msra.mxu1 %v394_v32  ;;  %371 = vmatpush3.bf16.msra.mxu0 %v394_v32  ;;  %p479_p12 = scmp.lt.s32.totalorder %s477_s22, %s473_s21 }
  0x42   :  { %p480_p13 = por %p479_p12, %p478_p11 }
  0x43   :  { %381 = vmatmul.mubr.msk.bf16.vlgmr.msra.gmra.mrb[0].mxu1 %vm233_vm1, %v280_v34 }
  0x44   :  { %p481_p0 = pnand %p480_p13, %p474_p10 }
  0xc7   :  { %v73_v6 = vpop.xlane.xlu0 %72 }
  0xc8   :  { %v81_v7 = vmul.f32 0.03125, %v73_v6  ;;  %v79_v23 = vpop.xlane.xlu1 %78 }
  0xc9   :  { %v83_v24 = vmul.f32 0.03125, %v79_v23 }
  0xca   :  { %v84_v8 = vsub.f32 %v65_v0, %v81_v7 }
  0xcb   :  { %v76_v9 = vpop.xlane.xlu0 %75  ;;  %v622_v25 = vsub.f32 %v67_v2, %v83_v24 }
  0xcc   :  { %v82_v10 = vmul.f32 0.03125, %v76_v9  ;;  %v87_v11 = vmul.f32 %v84_v8, %v84_v8 }
  0xcd   :  { %v89_v26 = vmul.f32 %v622_v25, %v622_v25 }
  0xce   :  { %v85_v12 = vsub.f32 %v66_v1, %v82_v10  ;;  %v90_v13 = vsel %vm70_vm0, %v87_v11, 0.0 }
  0xcf   :  { %91 = vadd.xlane.f32.xlu1 %v90_v13  ;;  %v96_v27 = vsel %vm70_vm0, %v89_v26, 0.0 }
  0xd0   :  { %v88_v14 = vmul.f32 %v85_v12, %v85_v12 }
  0xd2   :  { %v93_v16 = vsel %vm70_vm0, %v88_v14, 0.0 }
  0xd3   :  { %94 = vadd.xlane.f32.xlu0 %v93_v16 }
  0xe0   :  { %142 = vbcast.lane.b32.xlu1 %v140_v20, 256 }
  0xe9   :  { %135 = vbcast.lane.b32.xlu0 %v133_v22, 256 }
 0x104   :  { %97 = vadd.xlane.f32.xlu1 %v96_v27 }
 0x115   :  { %149 = vbcast.lane.b32.xlu1 %v147_v29, 256 }
 0x15c   :  { %v92_v36 = vpop.xlane.xlu1 %91 }
 0x15d   :  { %v99_v38 = vmul.f32 0.03125, %v92_v36 }
 0x15f   :  { %v102_v40 = vadd.f32 1e-05, %v99_v38 }
 0x160   :  { %v95_v35 = vpop.xlane.xlu0 %94  ;;  %v143_v44 = vpop.permute.xlu1 %142 }
 0x161   :  { %v100_v37 = vmul.f32 0.03125, %v95_v35  ;;  %v159_v48 = vsel %vm151_vm3, %v143_v44, 0.0 }
 0x162   :  { %v160_v52 = vrot.slane %v159_v48, 4 }
 0x163   :  { %v103_v39 = vadd.f32 1e-05, %v100_v37 }
 0x164   :  { %v136_v46 = vpop.permute.xlu0 %135  ;;  %v161_v57 = vadd.f32 %v160_v52, %v159_v48 }
 0x165   :  { %395 = vrsqrt.f32 %v103_v39  ;;  %v152_v50 = vsel %vm151_vm3, %v136_v46, 0.0 }
 0x166   :  { %397 = vrsqrt.f32 %v102_v40  ;;  %v153_v55 = vrot.slane %v152_v50, 4  ;;  %v162_v63 = vrot.slane %v161_v57, 2 }
 0x168   :  { %v154_v59 = vadd.f32 %v153_v55, %v152_v50  ;;  %v163_v6 = vadd.f32 %v162_v63, %v161_v57  ;;  %v318_v57 = vpop.f32.mrb[0].mxu1 }
 0x169   :  { %325 = vst.msk [vmem:[#allocation9] sm:$0x1] %vm324_vm6, %v318_v57 }
 0x16a   :  { %v155_v1 = vrot.slane %v154_v59, 2 }
 0x16c   :  { %v156_v9 = vadd.f32 %v155_v1, %v154_v59 }
 0x16e   :  { %v157_v15 = vrot.slane %v156_v9, 1 }
 0x16f   :  { %v396_v41 = vpop.eup %395 }
 0x170   :  { %v398_v42 = vpop.eup %397  ;;  %v109_v43 = vmul.f32 %v396_v41, %v85_v12  ;;  %v164_v12 = vrot.slane %v163_v6, 1  ;;  %v158_v21 = vadd.f32 %v157_v15, %v156_v9 }
 0x171   :  { %v108_v45 = vmul.f32 %v398_v42, %v84_v8 }
 0x172   :  { %v118_v49 = vmul.f32 %v356_v47, %v109_v43  ;;  %v165_v17 = vadd.f32 %v164_v12, %v163_v6 }
 0x173   :  { %v117_v51 = vmul.f32 %v356_v47, %v108_v45 }
 0x174   :  { %v127_v54 = vadd.f32 %v357_v53, %v118_v49 }
 0x175   :  { %v126_v56 = vadd.f32 %v357_v53, %v117_v51 }
 0x176   :  { %v174_v58 = vmul.f32 %v143_v44, %v127_v54 }
 0x177   :  { %v173_v61 = vmul.f32 %v136_v46, %v126_v56 }
 0x178   :  { %v183_v0 = vsel %vm70_vm0, %v174_v58, 0.0  ;;  %v382_v58 = vpop.f32.mrb[1].mxu1 }
 0x179   :  { %v176_v4 = vsel %vm70_vm0, %v173_v61, 0.0  ;;  %v184_v7 = vrot.slane %v183_v0, 4  ;;  %v321_v59 = vpop.f32.mrb[2].mxu1 }
 0x17a   :  { %v177_v10 = vrot.slane %v176_v4, 4 }
 0x17b   :  { %v185_v13 = vadd.f32 %v184_v7, %v183_v0 }
 0x17c   :  { %v178_v16 = vadd.f32 %v177_v10, %v176_v4 }
 0x17d   :  { %v186_v18 = vrot.slane %v185_v13, 2 }
 0x17e   :  { %v179_v22 = vrot.slane %v178_v16, 2 }
 0x17f   :  { %v187_v24 = vadd.f32 %v186_v18, %v185_v13 }
 0x180   :  { %v180_v28 = vadd.f32 %v179_v22, %v178_v16 }
 0x181   :  { %v188_v30 = vrot.slane %v187_v24, 1 }
 0x182   :  { %v181_v33 = vrot.slane %v180_v28, 1 }
 0x183   :  { %v189_v36 = vadd.f32 %v188_v30, %v187_v24 }
 0x184   :  { %v182_v39 = vadd.f32 %v181_v33, %v180_v28 }
 0x191   :  { %v98_v60 = vpop.xlane.xlu1 %97 }
 0x192   :  { %v101_v62 = vmul.f32 0.03125, %v98_v60  ;;  %v383_v60 = vpop.f32.mrb[3].mxu1 }
 0x194   :  { %v104_v2 = vadd.f32 1e-05, %v101_v62 }
 0x195   :  { %v150_v3 = vpop.permute.xlu1 %149 }
 0x196   :  { %399 = vrsqrt.f32 %v104_v2  ;;  %v166_v5 = vsel %vm151_vm3, %v150_v3, 0.0 }
 0x197   :  { %v167_v8 = vrot.slane %v166_v5, 4  ;;  %401 = vrcp.f32 %v165_v17 }
 0x198   :  { %403 = vrcp.f32 %v158_v21 }
 0x199   :  { %v168_v11 = vadd.f32 %v167_v8, %v166_v5 }
 0x19b   :  { %v169_v14 = vrot.slane %v168_v11, 2 }
 0x19d   :  { %v170_v19 = vadd.f32 %v169_v14, %v168_v11 }
 0x19f   :  { %v171_v27 = vrot.slane %v170_v19, 1 }
 0x1a0   :  { %v400_v20 = vpop.eup %399 }
 0x1a1   :  { %v110_v23 = vmul.f32 %v400_v20, %v622_v25  ;;  %v172_v31 = vadd.f32 %v171_v27, %v170_v19  ;;  %v402_v38 = vpop.eup %401 }
 0x1a2   :  { %v404_v25 = vpop.eup %403  ;;  %v200_v41 = vmul.f32 %v402_v38, %v189_v36 }
 0x1a3   :  { %v119_v26 = vmul.f32 %v356_v47, %v110_v23  ;;  %405 = vrcp.f32 %v172_v31  ;;  %v198_v43 = vmul.f32 %v404_v25, %v182_v39 }
 0x1a4   :  { %v208_v45 = vpack.c.bf16 %v200_v41, %v200_v41 }
 0x1a5   :  { %v128_v29 = vadd.f32 %v357_v53, %v119_v26  ;;  %v207_v48 = vpack.c.bf16 %v198_v43, %v198_v43 }
 0x1a6   :  { %v214_v50 = vunpack.c.l.b16 %v208_v45 }
 0x1a7   :  { %v175_v32 = vmul.f32 %v150_v3, %v128_v29  ;;  %v213_v52 = vunpack.c.l.b16 %v207_v48 }
 0x1a9   :  { %v190_v34 = vsel %vm70_vm0, %v175_v32, 0.0  ;;  %v217_v54 = vsel %vm216_vm4, %v214_v50, %v213_v52 }
 0x1aa   :  { %v191_v35 = vrot.slane %v190_v34, 4 }
 0x1ac   :  { %v192_v37 = vadd.f32 %v191_v35, %v190_v34 }
 0x1ad   :  { %v406_v47 = vpop.eup %405 }
 0x1ae   :  { %v193_v40 = vrot.slane %v192_v37, 2 }
 0x1b0   :  { %v194_v42 = vadd.f32 %v193_v40, %v192_v37 }
 0x1b2   :  { %v195_v44 = vrot.slane %v194_v42, 1 }
 0x1b4   :  { %v196_v46 = vadd.f32 %v195_v44, %v194_v42 }
 0x1b6   :  { %v202_v49 = vmul.f32 %v406_v47, %v196_v46 }
 0x1b8   :  { %v209_v51 = vpack.c.bf16 %v202_v49, %v202_v49 }
 0x1ba   :  { %v215_v53 = vunpack.c.l.b16 %v209_v51 }
 0x1bc   :  { %v219_v55 = vsel %vm218_vm5, %v215_v53, %v217_v54 }
 0x1bd   :  { %v220_v56 = vpack.c.b16 %v219_v55, %v219_v55 }
 0x1bf   :  { %373 = vmatmul.mubr.msk.bf16.vlgmr.msra.gmra.mrb[0].mxu0 %vm233_vm1, %v220_v56 }
 0x1c0   :  { %484 = shalt.err (!%p481_p0)
}
 0x1c1   :  { %s485_s24 = scalar_lea.hbm %s679_s7, 16 }
 0x1c2   :  { %p486_p1 = scmp.ne.s32.totalorder %s679_s7, %s485_s24  ;;  %p489_p2 = scmp.lt.u32.totalorder %s485_s24, %s679_s7 }
 0x1c4   :  { %p491_p3 = pnand %p489_p2, %p486_p1 }
 0x1c6   :  { %494 = shalt.err (!%p491_p3)
}
 0x1c7   :  { %345 = dma.vmem_to_hbm [thread:$0]  %s343_s3, 16, %s679_s7, [#allocation10]   ;;  %vm277_vm7 = vcmask 256000  }
 0x1c8   :  { %s533_s9 = smov [#allocation8]  }
 0x1c9   :  { %s332_s10 = sshll.u32 %s533_s9, 4  ;;  %s333_s10 = int_to_ptr.vmem [resolvable:$true] %s332_s10 }
 0x1ca   :  { %s495_s11 = scalar_lea.vmem %s333_s10, 64  ;;  %p500_p5 = scmp.lt.s32.totalorder %s333_s10, %s333_s10 }
 0x1cb   :  { %p496_p4 = scmp.ne.s32.totalorder %s333_s10, %s495_s11  ;;  %p501_p6 = scmp.lt.s32.totalorder %s495_s11, %s495_s11 }
 0x1cd   :  { %p502_p7 = por %p501_p6, %p500_p5 }
 0x1cf   :  { %p503_p8 = pnand %p502_p7, %p496_p4 }
 0x292   :  { %v271_v61 = vpop.f32.mrb[0].mxu0 }
 0x293   :  { %v374_v62 = vpop.f32.mrb[1].mxu0  ;;  %278 = vst.msk [vmem:[#allocation8] sm:$0x7] %vm277_vm7, %v271_v61 }
 0x294   :  { %v274_v63 = vpop.f32.mrb[2].mxu0 }
 0x295   :  { %506 = shalt.err (!%p503_p8)
}
 0x296   :  { %s507_s0 = scalar_lea.hbm %s678_s6, 64 }
 0x297   :  { %p508_p9 = scmp.ne.s32.totalorder %s678_s6, %s507_s0  ;;  %p511_p10 = scmp.lt.u32.totalorder %s507_s0, %s678_s6 }
 0x299   :  { %p513_p11 = pnand %p511_p10, %p508_p9 }
 0x29b   :  { %516 = shalt.err (!%p513_p11)
}
 0x29c   :  { %335 = dma.vmem_to_hbm [thread:$0]  %s333_s10, 64, %s678_s6, [#allocation4]   ;;  %v375_v0 = vpop.f32.mrb[3].mxu0 }
 0x29d   :  { %521 = dma.done.wait [#allocation4], 64  }
 0x29e   :  { %522 = vsyncadd [#allocation4], 4294967232 }
 0x29f   :  { %523 = dma.done.wait [#allocation10], 16  }
 0x2a0   :  { %524 = vsyncadd [#allocation10], 4294967280 }
 0x2a1   :  { %352 = vsyncpa [#allocation3], 1 }
 0x2a2   :  { %353 = vsyncpa [#allocation6], 1 }
 0x2a3   :  { %354 = vsyncpa [#allocation4], 1 }
 0x2a4   :  { %355 = vsyncpa [#allocation10], 1 }

</bundles_post_ra>
